<compile_context>
chip_gen: v7x
topology: tpu7x:2x2x1
jax: 0.10.0
libtpu: 0.0.40
codegen_flags: <defaults>
</compile_context>

<pallas_src>
import functools

import jax
import jax.numpy as jnp
from jax import lax
from jax.experimental import pallas as pl
from jax.experimental.pallas import tpu as pltpu


# ----------------------------- kernels ------------------------------------ #

def _layernorm_matmul(x_ref, w_ref, b_ref, eps):
    """LayerNorm (affine pre-folded into w/b) followed by the up-projection."""
    x = x_ref[...].astype(jnp.float32)                       # (tm, in_dim)
    mean = jnp.mean(x, axis=-1, keepdims=True)
    xc = x - mean
    var = jnp.mean(xc * xc, axis=-1, keepdims=True)
    xn = xc * lax.rsqrt(var + eps)                           # f32 normalization
    xn = xn.astype(w_ref.dtype)                              # native-dtype MXU feed
    y = jnp.dot(xn, w_ref[...], preferred_element_type=jnp.float32)
    return y + b_ref[...]                                    # folded bias (f32)


def _plain_kernel(x_ref, w_ref, b_ref, o_ref, *, eps):
    o_ref[...] = _layernorm_matmul(x_ref, w_ref, b_ref, eps).astype(o_ref.dtype)


def _fused_shuffle_kernel(x_ref, w_ref, b_ref, o_ref, y_scr, *,
                          eps, s1, W, out_dim, nh):
    """LayerNorm + matmul, then write rows directly in pixel-shuffled order.

    Input tile rows are (hh, w) with hh in [0, nh), w in [0, W).
    Output block rows are (hh, ah, w): row (hh*s1 + ah)*W + w takes the
    y[hh*W + w, ah*out_dim:(ah+1)*out_dim] slice.  (s2 == 1 path.)
    """
    y = _layernorm_matmul(x_ref, w_ref, b_ref, eps)
    y_scr[...] = y.astype(o_ref.dtype)

    sW = s1 * W

    def copy_row_group(src, dst):
        # src/dst are row offsets (multiples of 8 since W % 8 == 0).
        for ah in range(s1):                                  # s1 is small & static
            o_ref[pl.ds(dst + ah * W, W), :] = (
                y_scr[pl.ds(src, W), pl.ds(ah * out_dim, out_dim)])

    if nh <= 16:
        for hh in range(nh):                                  # fully unrolled, static offsets
            copy_row_group(hh * W, hh * sW)
    else:
        def body(hh, carry):
            copy_row_group(pl.multiple_of(hh * W, 8),
                           pl.multiple_of(hh * sW, 8))
            return carry
        lax.fori_loop(0, nh, body, 0)


# ----------------------------- wrapper ------------------------------------- #

def patch_split_pallas(x, gamma, beta, w_t, H, scale_factor=(2, 1), eps=1e-5,
                       target_tile_rows=1024,
                       vmem_budget_bytes=24 * 1024 * 1024):
    """
    Args:
      x:     (B, N, in_dim) with N = H*W          (PyTorch (B, H*W, in_dim))
      gamma: (in_dim,)  LayerNorm weight
      beta:  (in_dim,)  LayerNorm bias
      w_t:   (in_dim, out_dim*s1*s2)              (nn.Linear weight, transposed)
      H:     number of patches along the frequency axis
    Returns:
      (B, H*W*s1*s2, out_dim)
    """
    s1, s2 = scale_factor
    B, N, in_dim = x.shape
    assert N % H == 0, "N must be H * W"
    W = N // H
    out_total = w_t.shape[1]
    assert out_total % (s1 * s2) == 0
    out_dim = out_total // (s1 * s2)
    out_dtype = x.dtype

    # Fold the LayerNorm affine into the projection (linear has no bias).
    gamma_f = gamma.astype(jnp.float32)
    beta_f = beta.astype(jnp.float32)
    w_f = w_t.astype(jnp.float32)
    w_eff = (gamma_f[:, None] * w_f).astype(w_t.dtype)        # (in_dim, out_total)
    b_eff = beta_f[None, :] @ w_f                             # (1, out_total) f32

    rows = B * N
    x2d = x.reshape(rows, in_dim)

    # Fused pixel-shuffle writeback only for the common s2 == 1 case with
    # sublane-aligned W (module default scale_factor=(2, 1)).
    fuse = (s2 == 1) and (W % 8 == 0)

    # --- row-tile selection -------------------------------------------------
    # Tile rows must be a multiple of 8 (sublane packing); for the fused path
    # also a multiple of W so each tile maps to whole shuffled output rows.
    base = W if fuse else 8
    x_bytes = jnp.dtype(x.dtype).itemsize
    o_bytes = jnp.dtype(out_dtype).itemsize
    w_bytes = jnp.dtype(w_t.dtype).itemsize
    bytes_per_row = (2 * in_dim * x_bytes                     # x tile, double-buffered
                     + out_total * o_bytes                    # y scratch
                     + 2 * s1 * s2 * out_dim * o_bytes)       # out tile, double-buffered
    fixed_bytes = 2 * in_dim * out_total * w_bytes + 2 * out_total * 4
    row_budget = max(base, (vmem_budget_bytes - fixed_bytes) // max(1, bytes_per_row))
    target = min(target_tile_rows, row_budget)

    n_base = pl.cdiv(rows, base)
    # Keep at least 2 grid steps when possible (v7x has 2 TensorCores / chip).
    blocks = max(1, min(target // base, max(1, n_base // 2)))
    tm = base * blocks
    nh = tm // W

    rows_pad = pl.cdiv(rows, tm) * tm
    if rows_pad != rows:
        x2d = jnp.pad(x2d, ((0, rows_pad - rows), (0, 0)))
    grid = (rows_pad // tm,)

    compiler_params = pltpu.CompilerParams(
        dimension_semantics=("parallel",),
        vmem_limit_bytes=32 * 1024 * 1024,
    )
    in_specs = [
        pl.BlockSpec((tm, in_dim), lambda i: (i, 0)),           # x tile
        pl.BlockSpec((in_dim, out_total), lambda i: (0, 0)),    # weight (resident)
        pl.BlockSpec((1, out_total), lambda i: (0, 0)),         # folded bias
    ]

    if fuse:
        kernel = functools.partial(_fused_shuffle_kernel, eps=eps, s1=s1, W=W,
                                   out_dim=out_dim, nh=nh)
        out2d = pl.pallas_call(
            kernel,
            out_shape=jax.ShapeDtypeStruct((rows_pad * s1, out_dim), out_dtype),
            grid_spec=pltpu.PrefetchScalarGridSpec(
                num_scalar_prefetch=0,
                grid=grid,
                in_specs=in_specs,
                out_specs=pl.BlockSpec((tm * s1, out_dim), lambda i: (i, 0)),
                scratch_shapes=[pltpu.VMEM((tm, out_total), out_dtype)],
            ),
            compiler_params=compiler_params,
        )(x2d, w_eff, b_eff)
        out2d = out2d[: rows * s1]                             # drop padded tail
        return out2d.reshape(B, N * s1 * s2, out_dim)          # pure reshape, no transpose

    # ---- fallback path: plain kernel + XLA layout glue ----
    # TODO(synk): fuse the s2 > 1 / unaligned-W shuffle into the output writeback too.
    kernel = functools.partial(_plain_kernel, eps=eps)
    y2d = pl.pallas_call(
        kernel,
        out_shape=jax.ShapeDtypeStruct((rows_pad, out_total), out_dtype),
        grid_spec=pltpu.PrefetchScalarGridSpec(
            num_scalar_prefetch=0,
            grid=grid,
            in_specs=in_specs,
            out_specs=pl.BlockSpec((tm, out_total), lambda i: (i, 0)),
        ),
        compiler_params=compiler_params,
    )(x2d, w_eff, b_eff)
    y = y2d[:rows].reshape(B, H, W, s1, s2, out_dim)
    y = jnp.transpose(y, (0, 1, 3, 2, 4, 5))
    return y.reshape(B, H * s1 * W * s2, out_dim)


# ----------------------------- reference / test ----------------------------- #

def _reference(x, gamma, beta, w_t, H, scale_factor=(2, 1), eps=1e-5):
    """Pure-JAX reference mirroring the PyTorch forward (unfolded affine)."""
    s1, s2 = scale_factor
    B, N, in_dim = x.shape
    out_total = w_t.shape[1]
    out_dim = out_total // (s1 * s2)
    W = N // H
    xf = x.astype(jnp.float32)
    mean = jnp.mean(xf, axis=-1, keepdims=True)
    var = jnp.mean((xf - mean) ** 2, axis=-1, keepdims=True)
    xn = (xf - mean) / jnp.sqrt(var + eps) * gamma.astype(jnp.float32) \
        + beta.astype(jnp.float32)
    y = xn @ w_t.astype(jnp.float32)
    y = y.reshape(B, H, W, s1, s2, out_dim)
    y = jnp.transpose(y, (0, 1, 3, 2, 4, 5))
    return y.reshape(B, H * s1 * W * s2, out_dim).astype(x.dtype)


if __name__ == "__main__":
    def run_case(key, B, H, W, in_dim, out_dim, scale):
        s1, s2 = scale
        N = H * W
        kx, kg, kb, kw = jax.random.split(key, 4)
        x = jax.random.normal(kx, (B, N, in_dim), dtype=jnp.float32)
        gamma = 1.0 + 0.1 * jax.random.normal(kg, (in_dim,), dtype=jnp.float32)
        beta = 0.1 * jax.random.normal(kb, (in_dim,), dtype=jnp.float32)
        # nn.Linear weight is (out_features, in_features); kernel consumes its transpose.
        w = 0.05 * jax.random.normal(kw, (out_dim * s1 * s2, in_dim), dtype=jnp.float32)
        w_t = w.T
        out = jax.block_until_ready(
            patch_split_pallas(x, gamma, beta, w_t, H, scale_factor=scale))
        ref = _reference(x, gamma, beta, w_t, H, scale_factor=scale)
        assert out.shape == (B, N * s1 * s2, out_dim), out.shape
        err = float(jnp.max(jnp.abs(out - ref)))
        assert jnp.allclose(out, ref, atol=2e-4, rtol=2e-4), f"mismatch: {err}"

    key = jax.random.PRNGKey(0)
    k1, k2, k3 = jax.random.split(key, 3)
    # Primary case: fused pixel-shuffle path, multi-tile grid.
    run_case(k1, B=2, H=4, W=16, in_dim=32, out_dim=16, scale=(2, 1))
    # Ragged row count -> exercises the padded tail tile.
    run_case(k2, B=1, H=5, W=8, in_dim=32, out_dim=16, scale=(2, 1))
    # s2 > 1 -> fallback (unfused shuffle) path.
    run_case(k3, B=1, H=4, W=8, in_dim=32, out_dim=8, scale=(2, 2))
    print("KERNEL_OK")
</pallas_src>

<mosaic_0001>
module attributes {stable_mosaic.version = 11 : i64} {
  func.func @_fused_shuffle_kernel(%arg0: i32, %arg1: memref<64x32xf32, #tpu.memory_space<vmem>>, %arg2: memref<32x32xf32, #tpu.memory_space<vmem>>, %arg3: memref<1x32xf32, #tpu.memory_space<vmem>>, %arg4: memref<128x16xf32, #tpu.memory_space<vmem>>, %arg5: memref<64x32xf32, #tpu.memory_space<vmem>>) attributes {dimension_semantics = [#tpu.dimension_semantics<parallel>], iteration_bounds = array<i64: 2>, scalar_prefetch = 0 : i64, scratch_operands = 1 : i64, tpu.core_type = #tpu.core_type<tc>, window_params = [{transform_indices = @transform_0, window_bounds = array<i64: 64, 32>}, {pipeline_mode = #tpu.pipeline_mode<synchronous>, transform_indices = @transform_1, window_bounds = array<i64: 32, 32>}, {pipeline_mode = #tpu.pipeline_mode<synchronous>, transform_indices = @transform_2, window_bounds = array<i64: 1, 32>}, {transform_indices = @transform_3, window_bounds = array<i64: 128, 16>}]} {
    %c0 = arith.constant 0 : index
    %c0_0 = arith.constant 0 : index
    %0 = vector.load %arg1[%c0, %c0_0] : memref<64x32xf32, #tpu.memory_space<vmem>>, vector<64x32xf32>
    %cst = arith.constant dense<0.000000e+00> : vector<64xf32>
    %1 = vector.multi_reduction <add>, %0, %cst [1] : vector<64x32xf32> to vector<64xf32>
    %2 = vector.shape_cast %1 : vector<64xf32> to vector<64x1xf32>
    %cst_1 = arith.constant 3.200000e+01 : f32
    %3 = vector.broadcast %cst_1 : f32 to vector<64x1xf32>
    %4 = arith.divf %2, %3 : vector<64x1xf32>
    %5 = vector.broadcast %4 : vector<64x1xf32> to vector<64x32xf32>
    %6 = arith.subf %0, %5 : vector<64x32xf32>
    %7 = arith.mulf %6, %6 : vector<64x32xf32>
    %cst_2 = arith.constant dense<0.000000e+00> : vector<64xf32>
    %8 = vector.multi_reduction <add>, %7, %cst_2 [1] : vector<64x32xf32> to vector<64xf32>
    %9 = vector.shape_cast %8 : vector<64xf32> to vector<64x1xf32>
    %cst_3 = arith.constant 3.200000e+01 : f32
    %10 = vector.broadcast %cst_3 : f32 to vector<64x1xf32>
    %11 = arith.divf %9, %10 : vector<64x1xf32>
    %cst_4 = arith.constant 9.99999974E-6 : f32
    %12 = vector.broadcast %cst_4 : f32 to vector<64x1xf32>
    %13 = arith.addf %11, %12 : vector<64x1xf32>
    %14 = math.rsqrt %13 : vector<64x1xf32>
    %15 = vector.broadcast %14 : vector<64x1xf32> to vector<64x32xf32>
    %16 = arith.mulf %6, %15 : vector<64x32xf32>
    %c0_5 = arith.constant 0 : index
    %c0_6 = arith.constant 0 : index
    %17 = vector.load %arg2[%c0_5, %c0_6] : memref<32x32xf32, #tpu.memory_space<vmem>>, vector<32x32xf32>
    %cst_7 = arith.constant dense<0.000000e+00> : vector<64x32xf32>
    %18 = tpu.matmul %16, %17, %cst_7 {dimension_numbers = #tpu.dot_dimension_numbers<[1], [0], [0], [1], [0, 0, 1, 1], [], []>} : vector<64x32xf32>, vector<32x32xf32>, vector<64x32xf32> -> vector<64x32xf32>
    %c0_8 = arith.constant 0 : index
    %c0_9 = arith.constant 0 : index
    %19 = vector.load %arg3[%c0_8, %c0_9] : memref<1x32xf32, #tpu.memory_space<vmem>>, vector<1x32xf32>
    %20 = vector.broadcast %19 : vector<1x32xf32> to vector<64x32xf32>
    %21 = arith.addf %18, %20 : vector<64x32xf32>
    %c0_10 = arith.constant 0 : index
    %c0_11 = arith.constant 0 : index
    %22 = vector.load %arg5[%c0_10, %c0_11] : memref<64x32xf32, #tpu.memory_space<vmem>>, vector<64x32xf32>
    tpu.vector_store %arg5[%c0_10, %c0_11], %21 {strides = array<i32>} : memref<64x32xf32, #tpu.memory_space<vmem>>, vector<64x32xf32>,
    %c0_12 = arith.constant 0 : index
    %c0_13 = arith.constant 0 : index
    %23 = vector.load %arg5[%c0_12, %c0_13] : memref<64x32xf32, #tpu.memory_space<vmem>>, vector<16x16xf32>
    %c0_14 = arith.constant 0 : index
    %c0_15 = arith.constant 0 : index
    %24 = vector.load %arg4[%c0_14, %c0_15] : memref<128x16xf32, #tpu.memory_space<vmem>>, vector<16x16xf32>
    tpu.vector_store %arg4[%c0_14, %c0_15], %23 {strides = array<i32>} : memref<128x16xf32, #tpu.memory_space<vmem>>, vector<16x16xf32>,
    %c0_16 = arith.constant 0 : index
    %c16 = arith.constant 16 : index
    %25 = vector.load %arg5[%c0_16, %c16] : memref<64x32xf32, #tpu.memory_space<vmem>>, vector<16x16xf32>
    %c16_17 = arith.constant 16 : index
    %c0_18 = arith.constant 0 : index
    %26 = vector.load %arg4[%c16_17, %c0_18] : memref<128x16xf32, #tpu.memory_space<vmem>>, vector<16x16xf32>
    tpu.vector_store %arg4[%c16_17, %c0_18], %25 {strides = array<i32>} : memref<128x16xf32, #tpu.memory_space<vmem>>, vector<16x16xf32>,
    %c16_19 = arith.constant 16 : index
    %c0_20 = arith.constant 0 : index
    %27 = vector.load %arg5[%c16_19, %c0_20] : memref<64x32xf32, #tpu.memory_space<vmem>>, vector<16x16xf32>
    %c32 = arith.constant 32 : index
    %c0_21 = arith.constant 0 : index
    %28 = vector.load %arg4[%c32, %c0_21] : memref<128x16xf32, #tpu.memory_space<vmem>>, vector<16x16xf32>
    tpu.vector_store %arg4[%c32, %c0_21], %27 {strides = array<i32>} : memref<128x16xf32, #tpu.memory_space<vmem>>, vector<16x16xf32>,
    %c16_22 = arith.constant 16 : index
    %c16_23 = arith.constant 16 : index
    %29 = vector.load %arg5[%c16_22, %c16_23] : memref<64x32xf32, #tpu.memory_space<vmem>>, vector<16x16xf32>
    %c48 = arith.constant 48 : index
    %c0_24 = arith.constant 0 : index
    %30 = vector.load %arg4[%c48, %c0_24] : memref<128x16xf32, #tpu.memory_space<vmem>>, vector<16x16xf32>
    tpu.vector_store %arg4[%c48, %c0_24], %29 {strides = array<i32>} : memref<128x16xf32, #tpu.memory_space<vmem>>, vector<16x16xf32>,
    %c32_25 = arith.constant 32 : index
    %c0_26 = arith.constant 0 : index
    %31 = vector.load %arg5[%c32_25, %c0_26] : memref<64x32xf32, #tpu.memory_space<vmem>>, vector<16x16xf32>
    %c64 = arith.constant 64 : index
    %c0_27 = arith.constant 0 : index
    %32 = vector.load %arg4[%c64, %c0_27] : memref<128x16xf32, #tpu.memory_space<vmem>>, vector<16x16xf32>
    tpu.vector_store %arg4[%c64, %c0_27], %31 {strides = array<i32>} : memref<128x16xf32, #tpu.memory_space<vmem>>, vector<16x16xf32>,
    %c32_28 = arith.constant 32 : index
    %c16_29 = arith.constant 16 : index
    %33 = vector.load %arg5[%c32_28, %c16_29] : memref<64x32xf32, #tpu.memory_space<vmem>>, vector<16x16xf32>
    %c80 = arith.constant 80 : index
    %c0_30 = arith.constant 0 : index
    %34 = vector.load %arg4[%c80, %c0_30] : memref<128x16xf32, #tpu.memory_space<vmem>>, vector<16x16xf32>
    tpu.vector_store %arg4[%c80, %c0_30], %33 {strides = array<i32>} : memref<128x16xf32, #tpu.memory_space<vmem>>, vector<16x16xf32>,
    %c48_31 = arith.constant 48 : index
    %c0_32 = arith.constant 0 : index
    %35 = vector.load %arg5[%c48_31, %c0_32] : memref<64x32xf32, #tpu.memory_space<vmem>>, vector<16x16xf32>
    %c96 = arith.constant 96 : index
    %c0_33 = arith.constant 0 : index
    %36 = vector.load %arg4[%c96, %c0_33] : memref<128x16xf32, #tpu.memory_space<vmem>>, vector<16x16xf32>
    tpu.vector_store %arg4[%c96, %c0_33], %35 {strides = array<i32>} : memref<128x16xf32, #tpu.memory_space<vmem>>, vector<16x16xf32>,
    %c48_34 = arith.constant 48 : index
    %c16_35 = arith.constant 16 : index
    %37 = vector.load %arg5[%c48_34, %c16_35] : memref<64x32xf32, #tpu.memory_space<vmem>>, vector<16x16xf32>
    %c112 = arith.constant 112 : index
    %c0_36 = arith.constant 0 : index
    %38 = vector.load %arg4[%c112, %c0_36] : memref<128x16xf32, #tpu.memory_space<vmem>>, vector<16x16xf32>
    tpu.vector_store %arg4[%c112, %c0_36], %37 {strides = array<i32>} : memref<128x16xf32, #tpu.memory_space<vmem>>, vector<16x16xf32>,
    return
  }
  func.func @transform_0(%arg0: i32) -> (i32, i32) {
    %c0_i32 = arith.constant 0 : i32
    %c0_i32_0 = arith.constant 0 : i32
    return %arg0, %c0_i32 : i32, i32
  }
  func.func @transform_1(%arg0: i32) -> (i32, i32) {
    %c0_i32 = arith.constant 0 : i32
    %c0_i32_0 = arith.constant 0 : i32
    %c0_i32_1 = arith.constant 0 : i32
    return %c0_i32, %c0_i32_0 : i32, i32
  }
  func.func @transform_2(%arg0: i32) -> (i32, i32) {
    %c0_i32 = arith.constant 0 : i32
    %c0_i32_0 = arith.constant 0 : i32
    %c0_i32_1 = arith.constant 0 : i32
    return %c0_i32, %c0_i32_0 : i32, i32
  }
  func.func @transform_3(%arg0: i32) -> (i32, i32) {
    %c0_i32 = arith.constant 0 : i32
    %c0_i32_0 = arith.constant 0 : i32
    return %arg0, %c0_i32 : i32, i32
  }
}

</mosaic_0001>

<bundles_post_ra>
// kernel: tpu_custom_call.1
= control target key start
LH: loop header
LB: loop body
LE: loop exit
PB: predicated region body
PF: predicated region fallthrough
CT: control target
= control target key end

     0   :  { %s675_s12 = smov 0   ;;  %s817_s0 = inlined_call_operand.vmem [shape: f32[128,32], index: 0, kind: input, shape index: {}]   ;;  %s818_s1 = inlined_call_operand.vmem [shape: f32[32,32], index: 1, kind: input, shape index: {}]   ;;  %s819_s2 = inlined_call_operand.vmem [shape: f32[1,32], index: 2, kind: input, shape index: {}]   ;;  %s820_s3 = inlined_call_operand.vmem [shape: f32[256,16], index: 3, kind: output, shape index: {}]  }
   0x1 LB: > { %s557_s13 = sadd.s32 4294967295, %s652_s12   ;;  %p561_p0 = scmp.ge.s32.totalorder %s652_s12, 1  ;;  %s652_s12 = sphi %s675_s12, %s13_s12  }
   0x2   : > { %p138_p1 = scmp.lt.s32.totalorder %s652_s12, 3 }
   0x4   : > { %p139_p2 = pnand %p561_p0, %p138_p1 }
   0x5   : > { %s562_s14 = sshll.u32 (!%p139_p2), %s557_s13, 3  ;;  %vm182_vm0 = vcmask (!%p139_p2), 261120   ;;  %v288_v56 = vld [vmem:[%s818_s1] sm:$0xff] (!%p139_p2)  ;;  %v289_v57 = vld [vmem:[%s818_s1 + $0x8] sm:$0xff] (!%p139_p2)  ;;  %v290_v59 = vld [vmem:[%s818_s1 + $0x10] sm:$0xff] (!%p139_p2)  ;;  %s564_s27 = sshll.u32 (!%p139_p2), %s557_s13, 4 }
   0x6   : > { %142 = sbr.rel (%p139_p2) target bundleno = 686 (0x2ae), region = 32  ;;  %p163_p3 = scmp.lt.s32.totalorder (!%p139_p2), %s562_s14, 15  ;;  %v609_v58 = vpack.c.bf16 (!%p139_p2), %v289_v57, %v288_v56  ;;  %v291_v60 = vld [vmem:[%s818_s1 + $0x18] sm:$0xff] (!%p139_p2)  ;;  %vm438_vm1 = vcmask (!%p139_p2), 130048  }
   0x7   : > { %v613_v61 = vpack.c.bf16 (!%p139_p2), %v291_v60, %v290_v59  ;;  %p169_p4 = scmp.lt.s32.totalorder (!%p139_p2), %s564_s27, 31  ;;  %s654_s7 = smov (!%p139_p2), 112  }
   0x8   : > { %610 = vmatprep.subr.bf16.mxu0 (!%p139_p2), %v609_v58  ;;  %617 = vmatprep.subr.bf16.mxu1 (!%p139_p2), %v609_v58 }
   0x9   : > { %612 = vmatpush3.bf16.msra.mxu0 (!%p139_p2), %v609_v58  ;;  %619 = vmatpush3.bf16.msra.mxu1 (!%p139_p2), %v609_v58 }
   0xa   : > { %614 = vmatprep.subr.bf16.mxu0 (!%p139_p2), %v613_v61  ;;  %618 = vmatprep.subr.bf16.mxu1 (!%p139_p2), %v613_v61 }
   0xd   : > { %s822_s14 = smov (!%p163_p3, %s562_s14), 15  ;;  %616 = vmatpush3.bf16.msra.mxu0 %v613_v61  ;;  %620 = vmatpush3.bf16.msra.mxu1 %v613_v61  ;;  %s824_s27 = smov (!%p169_p4, %s564_s27), 31 }
   0xe   : > { %s563_s15 = sshll.u32 %s822_s14, 3  ;;  %s565_s30 = sshll.u32 %s824_s27, 3 }
   0xf   : > { %s166_s18 = scalar_lea.vmem %s817_s0, %s563_s15  ;;  %s776_s6 = scalar_lea.vmem %s820_s3, %s565_s30 }
  0x10   : > { %v174_v0 = vld [vmem:[%s166_s18] sm:$0xff]  ;;  %v175_v1 = vld [vmem:[%s166_s18 + $0x8] sm:$0xff]  ;;  %v176_v8 = vld [vmem:[%s166_s18 + $0x10] sm:$0xff] }
  0x11   : > { %v178_v2 = vld [vmem:[%s166_s18 + $0x20] sm:$0xff]  ;;  %v183_v3 = vsel %vm182_vm0, %v174_v0, 0.0  ;;  %v186_v4 = vsel %vm182_vm0, %v175_v1, 0.0  ;;  %v179_v5 = vld [vmem:[%s166_s18 + $0x28] sm:$0xff]  ;;  %v180_v9 = vld [vmem:[%s166_s18 + $0x30] sm:$0xff]  ;;  %v189_v10 = vsel %vm182_vm0, %v176_v8, 0.0 }
  0x12   : > { %184 = vadd.xlane.f32.xlu0 %v183_v3  ;;  %187 = vadd.xlane.f32.xlu1 %v186_v4  ;;  %v195_v6 = vsel %vm182_vm0, %v178_v2, 0.0  ;;  %v198_v7 = vsel %vm182_vm0, %v179_v5, 0.0  ;;  %v201_v11 = vsel %vm182_vm0, %v180_v9, 0.0  ;;  %v177_v12 = vld [vmem:[%s166_s18 + $0x18] sm:$0xff] }
  0x13   : > { %v181_v13 = vld [vmem:[%s166_s18 + $0x38] sm:$0xff]  ;;  %v192_v14 = vsel %vm182_vm0, %v177_v12, 0.0 }
  0x14   : > { %v204_v15 = vsel %vm182_vm0, %v181_v13, 0.0 }
  0x16   : > { %196 = vadd.xlane.f32.xlu0 %v195_v6  ;;  %199 = vadd.xlane.f32.xlu1 %v198_v7 }
  0x1a   : > { %190 = vadd.xlane.f32.xlu0 %v189_v10  ;;  %202 = vadd.xlane.f32.xlu1 %v201_v11 }
  0x1e   : > { %193 = vadd.xlane.f32.xlu0 %v192_v14  ;;  %205 = vadd.xlane.f32.xlu1 %v204_v15 }
  0x9f   : > { %v185_v16 = vpop.xlane.xlu0 %184  ;;  %v188_v17 = vpop.xlane.xlu1 %187 }
  0xa0   : > { %v208_v18 = vmul.f32 0.03125, %v185_v16  ;;  %v209_v19 = vmul.f32 0.03125, %v188_v17 }
  0xa2   : > { %v696_v20 = vsub.f32 %v174_v0, %v208_v18  ;;  %v698_v21 = vsub.f32 %v175_v1, %v209_v19 }
  0xa3   : > { %v197_v22 = vpop.xlane.xlu0 %196  ;;  %v200_v23 = vpop.xlane.xlu1 %199 }
  0xa4   : > { %v212_v24 = vmul.f32 0.03125, %v197_v22  ;;  %v213_v25 = vmul.f32 0.03125, %v200_v23  ;;  %v224_v26 = vmul.f32 %v696_v20, %v696_v20  ;;  %v225_v27 = vmul.f32 %v698_v21, %v698_v21 }
  0xa6   : > { %v704_v28 = vsub.f32 %v178_v2, %v212_v24  ;;  %v706_v29 = vsub.f32 %v179_v5, %v213_v25  ;;  %v232_v30 = vsel %vm182_vm0, %v224_v26, 0.0  ;;  %v235_v33 = vsel %vm182_vm0, %v225_v27, 0.0 }
  0xa7   : > { %233 = vadd.xlane.f32.xlu0 %v232_v30  ;;  %v191_v31 = vpop.xlane.xlu0 %190  ;;  %v203_v32 = vpop.xlane.xlu1 %202 }
  0xa8   : > { %v210_v34 = vmul.f32 0.03125, %v191_v31  ;;  %v214_v35 = vmul.f32 0.03125, %v203_v32  ;;  %v228_v36 = vmul.f32 %v704_v28, %v704_v28  ;;  %v229_v37 = vmul.f32 %v706_v29, %v706_v29 }
  0xaa   : > { %v714_v38 = vsub.f32 %v176_v8, %v210_v34  ;;  %v716_v39 = vsub.f32 %v180_v9, %v214_v35  ;;  %v244_v40 = vsel %vm182_vm0, %v228_v36, 0.0  ;;  %v247_v43 = vsel %vm182_vm0, %v229_v37, 0.0 }
  0xab   : > { %236 = vadd.xlane.f32.xlu0 %v235_v33  ;;  %245 = vadd.xlane.f32.xlu1 %v244_v40  ;;  %v194_v41 = vpop.xlane.xlu0 %193  ;;  %v206_v42 = vpop.xlane.xlu1 %205 }
  0xac   : > { %v211_v44 = vmul.f32 0.03125, %v194_v41  ;;  %v215_v45 = vmul.f32 0.03125, %v206_v42  ;;  %v226_v46 = vmul.f32 %v714_v38, %v714_v38  ;;  %v230_v47 = vmul.f32 %v716_v39, %v716_v39 }
  0xae   : > { %v724_v48 = vsub.f32 %v177_v12, %v211_v44  ;;  %v726_v49 = vsub.f32 %v181_v13, %v215_v45  ;;  %v238_v50 = vsel %vm182_vm0, %v226_v46, 0.0  ;;  %v250_v51 = vsel %vm182_vm0, %v230_v47, 0.0 }
  0xaf   : > { %248 = vadd.xlane.f32.xlu1 %v247_v43  ;;  %239 = vadd.xlane.f32.xlu0 %v238_v50 }
  0xb0   : > { %v227_v52 = vmul.f32 %v724_v48, %v724_v48  ;;  %v231_v53 = vmul.f32 %v726_v49, %v726_v49 }
  0xb2   : > { %v241_v54 = vsel %vm182_vm0, %v227_v52, 0.0  ;;  %v253_v55 = vsel %vm182_vm0, %v231_v53, 0.0 }
  0xb3   : > { %251 = vadd.xlane.f32.xlu1 %v250_v51  ;;  %242 = vadd.xlane.f32.xlu0 %v241_v54 }
  0xb7   : > { %254 = vadd.xlane.f32.xlu1 %v253_v55 }
 0x134   : > { %v234_v62 = vpop.xlane.xlu0 %233 }
 0x135   : > { %v256_v63 = vmul.f32 0.03125, %v234_v62 }
 0x137   : > { %v264_v0 = vadd.f32 1e-05, %v256_v63 }
 0x138   : > { %v246_v1 = vpop.xlane.xlu1 %245  ;;  %v237_v2 = vpop.xlane.xlu0 %236 }
 0x139   : > { %630 = vrsqrt.f32 %v264_v0  ;;  %v260_v3 = vmul.f32 0.03125, %v246_v1  ;;  %v257_v4 = vmul.f32 0.03125, %v237_v2 }
 0x13b   : > { %v268_v5 = vadd.f32 1e-05, %v260_v3  ;;  %v265_v6 = vadd.f32 1e-05, %v257_v4 }
 0x13c   : > { %v249_v7 = vpop.xlane.xlu1 %248  ;;  %v240_v8 = vpop.xlane.xlu0 %239 }
 0x13d   : > { %632 = vrsqrt.f32 %v268_v5  ;;  %v261_v9 = vmul.f32 0.03125, %v249_v7  ;;  %v258_v10 = vmul.f32 0.03125, %v240_v8 }
 0x13e   : > { %634 = vrsqrt.f32 %v265_v6 }
 0x13f   : > { %v269_v11 = vadd.f32 1e-05, %v261_v9  ;;  %v266_v12 = vadd.f32 1e-05, %v258_v10 }
 0x140   : > { %v252_v13 = vpop.xlane.xlu1 %251  ;;  %v243_v14 = vpop.xlane.xlu0 %242 }
 0x141   : > { %636 = vrsqrt.f32 %v269_v11  ;;  %v262_v15 = vmul.f32 0.03125, %v252_v13  ;;  %v259_v16 = vmul.f32 0.03125, %v243_v14 }
 0x142   : > { %638 = vrsqrt.f32 %v266_v12 }
 0x143   : > { %v631_v17 = vpop.eup %630  ;;  %v270_v18 = vadd.f32 1e-05, %v262_v15  ;;  %v267_v19 = vadd.f32 1e-05, %v259_v16 }
 0x144   : > { %v255_v22 = vpop.xlane.xlu1 %254  ;;  %v280_v23 = vmul.f32 %v631_v17, %v696_v20 }
 0x145   : > { %640 = vrsqrt.f32 %v270_v18  ;;  %v263_v24 = vmul.f32 0.03125, %v255_v22 }
 0x146   : > { %642 = vrsqrt.f32 %v267_v19  ;;  %597 = vmatprep.mubr.msk.f32.mxu0 %vm182_vm0, %v280_v23 }
 0x147   : > { %v633_v25 = vpop.eup %632  ;;  %v271_v26 = vadd.f32 1e-05, %v263_v24 }
 0x148   : > { %v635_v27 = vpop.eup %634  ;;  %v284_v30 = vmul.f32 %v633_v25, %v704_v28 }
 0x149   : > { %644 = vrsqrt.f32 %v271_v26  ;;  %v281_v31 = vmul.f32 %v635_v27, %v698_v21 }
 0x14a   : > { %603 = vmatprep.mubr.msk.f32.mxu1 %vm182_vm0, %v284_v30 }
 0x14b   : > { %v637_v32 = vpop.eup %636  ;;  %598 = vmatmul.mubr.msk.f32.vlgmr.msra.gmra.mrb[0].mxu0 %vm182_vm0, %v281_v31 }
 0x14c   : > { %v639_v20 = vpop.eup %638  ;;  %v285_v33 = vmul.f32 %v637_v32, %v706_v29  ;;  %v566_v29 = vld [vmem:[%s819_s2] ss:$0 sm:$0xff] }
 0x14d   : > { %v282_v34 = vmul.f32 %v639_v20, %v714_v38 }
 0x14e   : > { %604 = vmatmul.mubr.msk.f32.vlgmr.msra.gmra.mrb[0].mxu1 %vm182_vm0, %v285_v33 }
 0x14f   : > { %v641_v35 = vpop.eup %640  ;;  %600 = vmatprep.mubr.msk.f32.mxu0 %vm182_vm0, %v282_v34 }
 0x150   : > { %v643_v28 = vpop.eup %642  ;;  %v286_v36 = vmul.f32 %v641_v35, %v716_v39 }
 0x151   : > { %v283_v21 = vmul.f32 %v643_v28, %v724_v48 }
 0x152   : > { %606 = vmatprep.mubr.msk.f32.mxu1 %vm182_vm0, %v286_v36 }
 0x153   : > { %v645_v37 = vpop.eup %644  ;;  %601 = vmatmul.mubr.msk.f32.gmra.mrb[2].mxu0 %vm182_vm0, %v283_v21 }
 0x154   : > { %v287_v40 = vmul.f32 %v645_v37, %v726_v49 }
 0x156   : > { %607 = vmatmul.mubr.msk.f32.gmra.mrb[2].mxu1 %vm182_vm0, %v287_v40 }
 0x21e   : > { %v599_v38 = vpop.f32.mrb[0].mxu0 }
 0x21f   : > { %v395_v39 = vadd.f32 %v599_v38, %v566_v29  ;;  %v389_v41 = vpop.f32.mrb[1].mxu0 }
 0x220   : > { %v390_v42 = vadd.f32 %v566_v29, %v389_v41 }
 0x221   : > { %429 = vst.msk [vmem:[#allocation2 + $0x8] sm:$0xff] %vm182_vm0, %v395_v39  ;;  %v605_v43 = vpop.f32.mrb[0].mxu1 }
 0x222   : > { %428 = vst.msk [vmem:[#allocation2] sm:$0xff] %vm182_vm0, %v390_v42  ;;  %v415_v44 = vadd.f32 %v605_v43, %v566_v29  ;;  %v409_v45 = vpop.f32.mrb[1].mxu1 }
 0x223   : > { %v410_v46 = vadd.f32 %v566_v29, %v409_v45 }
 0x224   : > { %433 = vst.msk [vmem:[#allocation2 + $0x28] sm:$0xff] %vm182_vm0, %v415_v44 }
 0x225   : > { %432 = vst.msk [vmem:[#allocation2 + $0x20] sm:$0xff] %vm182_vm0, %v410_v46 }
 0x226   : > { %v602_v47 = vpop.f32.mrb[2].mxu0 }
 0x227   : > { %v405_v48 = vadd.f32 %v602_v47, %v566_v29  ;;  %v399_v49 = vpop.f32.mrb[3].mxu0 }
 0x228   : > { %v437_v50 = vld [vmem:[#allocation2 + $0x8] sm:$0xff]  ;;  %v400_v51 = vadd.f32 %v566_v29, %v399_v49 }
 0x229   : > { %440 = vst.msk [vmem:[%s776_s6 + $0x8] sm:$0xff] %vm438_vm1, %v437_v50  ;;  %v436_v52 = vld [vmem:[#allocation2] sm:$0xff]  ;;  %447 = vrot.lane.b32.xlu1 %v437_v50, %s654_s7  ;;  %v608_v53 = vpop.f32.mrb[2].mxu1 }
 0x22a   : > { %431 = vst.msk [vmem:[#allocation2 + $0x18] sm:$0xff] %vm182_vm0, %v405_v48  ;;  %430 = vst.msk [vmem:[#allocation2 + $0x10] sm:$0xff] %vm182_vm0, %v400_v51  ;;  %v425_v54 = vadd.f32 %v608_v53, %v566_v29  ;;  %445 = vrot.lane.b32.xlu0 %v436_v52, %s654_s7  ;;  %v419_v55 = vpop.f32.mrb[3].mxu1 }
 0x22b   : > { %439 = vst.msk [vmem:[%s776_s6] sm:$0xff] %vm438_vm1, %v436_v52  ;;  %v470_v56 = vld [vmem:[#allocation2 + $0x28] sm:$0xff]  ;;  %v420_v57 = vadd.f32 %v566_v29, %v419_v55 }
 0x22c   : > { %472 = vst.msk [vmem:[%s776_s6 + $0x48] sm:$0xff] %vm438_vm1, %v470_v56  ;;  %v469_v58 = vld [vmem:[#allocation2 + $0x20] sm:$0xff] }
 0x22d   : > { %435 = vst.msk [vmem:[#allocation2 + $0x38] sm:$0xff] %vm182_vm0, %v425_v54  ;;  %434 = vst.msk [vmem:[#allocation2 + $0x30] sm:$0xff] %vm182_vm0, %v420_v57  ;;  %479 = vrot.lane.b32.xlu1 %v470_v56, %s654_s7 }
 0x22e   : > { %471 = vst.msk [vmem:[%s776_s6 + $0x40] sm:$0xff] %vm438_vm1, %v469_v58  ;;  %477 = vrot.lane.b32.xlu0 %v469_v58, %s654_s7 }
 0x231   : > { %v454_v59 = vld [vmem:[#allocation2 + $0x18] sm:$0xff]  ;;  %v453_v60 = vld [vmem:[#allocation2 + $0x10] sm:$0xff] }
 0x232   : > { %456 = vst.msk [vmem:[%s776_s6 + $0x28] sm:$0xff] %vm438_vm1, %v454_v59  ;;  %463 = vrot.lane.b32.xlu1 %v454_v59, %s654_s7  ;;  %455 = vst.msk [vmem:[%s776_s6 + $0x20] sm:$0xff] %vm438_vm1, %v453_v60 }
 0x234   : > { %v486_v61 = vld [vmem:[#allocation2 + $0x38] sm:$0xff]  ;;  %v485_v62 = vld [vmem:[#allocation2 + $0x30] sm:$0xff] }
 0x235   : > { %488 = vst.msk [vmem:[%s776_s6 + $0x68] sm:$0xff] %vm438_vm1, %v486_v61  ;;  %487 = vst.msk [vmem:[%s776_s6 + $0x60] sm:$0xff] %vm438_vm1, %v485_v62  ;;  %493 = vrot.lane.b32.xlu0 %v485_v62, %s654_s7 }
 0x236   : > { %461 = vrot.lane.b32.xlu1 %v453_v60, %s654_s7 }
 0x23a   : > { %495 = vrot.lane.b32.xlu1 %v486_v61, %s654_s7 }
 0x29b   : > { %v448_v63 = vpop.permute.xlu1 %447 }
 0x29c   : > { %452 = vst.msk [vmem:[%s776_s6 + $0x18] sm:$0xff] %vm438_vm1, %v448_v63  ;;  %v446_v0 = vpop.permute.xlu0 %445 }
 0x29d   : > { %451 = vst.msk [vmem:[%s776_s6 + $0x10] sm:$0xff] %vm438_vm1, %v446_v0 }
 0x29f   : > { %v480_v1 = vpop.permute.xlu1 %479 }
 0x2a0   : > { %484 = vst.msk [vmem:[%s776_s6 + $0x58] sm:$0xff] %vm438_vm1, %v480_v1  ;;  %v478_v2 = vpop.permute.xlu0 %477 }
 0x2a1   : > { %483 = vst.msk [vmem:[%s776_s6 + $0x50] sm:$0xff] %vm438_vm1, %v478_v2 }
 0x2a4   : > { %v464_v3 = vpop.permute.xlu1 %463 }
 0x2a5   : > { %468 = vst.msk [vmem:[%s776_s6 + $0x38] sm:$0xff] %vm438_vm1, %v464_v3 }
 0x2a7   : > { %v494_v5 = vpop.permute.xlu0 %493 }
 0x2a8   : > { %v462_v4 = vpop.permute.xlu1 %461  ;;  %499 = vst.msk [vmem:[%s776_s6 + $0x70] sm:$0xff] %vm438_vm1, %v494_v5 }
 0x2a9   : > { %467 = vst.msk [vmem:[%s776_s6 + $0x30] sm:$0xff] %vm438_vm1, %v462_v4 }
 0x2ac   : > { %v496_v6 = vpop.permute.xlu1 %495 }
 0x2ad   : > { %500 = vst.msk [vmem:[%s776_s6 + $0x78] sm:$0xff] %vm438_vm1, %v496_v6 }
 0x2ae PF: > { %s13_s12 = sadd.s32 1, %s652_s12  }
 0x2af   : > { %p10_p5 = scmp.ge.s32.totalorder %s13_s12, 4  }
 0x2b1   :  { %12 = sbr.rel (!%p10_p5) target bundleno = 1 (0x1), region = 62 }

</bundles_post_ra>
